<compile_context>
chip_gen: v6e
topology: v6e:2x2x1
jax: 0.10.0
libtpu: 0.0.40
codegen_flags: <defaults>
</compile_context>

<pallas_src>
import jax
import jax.numpy as jnp
from jax.experimental import pallas as pl
from jax.experimental.pallas import tpu as pltpu

# Model hyper-parameters (small synthetic shapes).
B, I, CIN, H, W = 2, 3, 4, 16, 16      # batch, n_instances, channels, spatial
CF = 32                                # backbone feature channels
K = 8                                  # head output_dimensions
AGGREGATION = "avg"                    # aggregation mode implemented here


def conv_mil_forward(x_nchw, wc, bc, wh, bh):
    """x_nchw: (B, I, CIN, H, W) f32; wc: (3,3,CIN,CF) HWIO; bc: (CF,);
    wh: (CF, K); bh: (K,).  Returns (B, K) f32."""
    b, n_inst, cin, h, w = x_nchw.shape
    cf = wc.shape[-1]
    k = wh.shape[-1]
    kpad = 128 * pl.cdiv(k, 128)           # lane-pad head output to >=128
    npix = n_inst * h * w                  # I*H*W columns (lane dim)
    ntc = 9 * cin                          # 3*3*CIN contraction rows
    inv_n = 1.0 / float(npix)              # instance-mean * GAP fold together

    # ---- layout plumbing in XLA (im2col + lane-dense transposes) ----
    xh = jnp.transpose(x_nchw, (0, 1, 3, 4, 2))                  # (B,I,H,W,Cin)
    xp = jnp.pad(xh, ((0, 0), (0, 0), (1, 1), (1, 1), (0, 0)))   # SAME pad
    taps = [xp[:, :, dh:dh + h, dw:dw + w, :]
            for dh in range(3) for dw in range(3)]               # 9 x (B,I,H,W,Cin)
    patches = jnp.stack(taps, axis=-2)                           # (B,I,H,W,9,Cin)
    patches = patches.reshape(b, npix, ntc)
    patches = jnp.transpose(patches, (0, 2, 1))                  # (B, 9*Cin, I*H*W)

    wm = jnp.transpose(wc.reshape(ntc, cf))                      # (CF, 9*Cin)
    bc_col = bc.reshape(cf, 1)                                   # bias broadcast over lanes
    wh_pad = jnp.pad(wh, ((0, 0), (0, kpad - k)))                # (CF, KPAD)
    bh_pad = jnp.pad(bh.reshape(1, k), ((0, 0), (0, kpad - k)))  # (1, KPAD)

    def kernel(p_ref, wm_ref, bc_ref, wh_ref, bh_ref, o_ref):
        patches_b = p_ref[0]                                     # (9*Cin, I*H*W)
        # Backbone 3x3 conv for all I instances as ONE MXU matmul.
        feat = jnp.dot(wm_ref[...], patches_b,
                       preferred_element_type=jnp.float32)       # (CF, I*H*W)
        feat = jnp.maximum(feat + bc_ref[...], 0.0)              # bias + ReLU
        # 'avg' over instances + GAP over spatial == mean over all lane cols.
        pooled = jnp.sum(feat, axis=1, keepdims=True) * inv_n    # (CF, 1)
        # Head: Linear against K-padded weight -> lane-dense (1, KPAD) logits.
        logits = jnp.dot(pooled.T, wh_ref[...],
                         preferred_element_type=jnp.float32) + bh_ref[...]
        o_ref[...] = logits.reshape(1, 1, kpad).astype(o_ref.dtype)

    out = pl.pallas_call(
        kernel,
        out_shape=jax.ShapeDtypeStruct((b, 1, kpad), jnp.float32),
        grid_spec=pltpu.PrefetchScalarGridSpec(
            num_scalar_prefetch=0,
            grid=(b,),
            in_specs=[
                pl.BlockSpec((1, ntc, npix), lambda bi: (bi, 0, 0)),
                pl.BlockSpec((cf, ntc), lambda bi: (0, 0)),
                pl.BlockSpec((cf, 1), lambda bi: (0, 0)),
                pl.BlockSpec((cf, kpad), lambda bi: (0, 0)),
                pl.BlockSpec((1, kpad), lambda bi: (0, 0)),
            ],
            out_specs=pl.BlockSpec((1, 1, kpad), lambda bi: (bi, 0, 0)),
        ),
        compiler_params=pltpu.CompilerParams(
            dimension_semantics=("parallel",)),
    )(patches, wm, bc_col, wh_pad, bh_pad)
    return out[:, 0, :k]


def reference(x_nchw, wc, bc, wh, bh):
    """Plain-JAX reference mirroring the PyTorch forward semantics."""
    b, n_inst, cin, h, w = x_nchw.shape
    cf = wc.shape[-1]
    xf = x_nchw.reshape(b * n_inst, cin, h, w).transpose(0, 2, 3, 1)  # NHWC
    feat = jax.lax.conv_general_dilated(
        xf, wc, window_strides=(1, 1), padding="SAME",
        dimension_numbers=("NHWC", "HWIO", "NHWC"))
    feat = jax.nn.relu(feat + bc.reshape(1, 1, 1, -1))
    feat = feat.reshape(b, n_inst, h, w, cf)
    feat = jnp.mean(feat, axis=1)                 # aggregation == 'avg'
    pooled = jnp.mean(feat, axis=(1, 2))          # GAP head
    return pooled @ wh + bh


if __name__ == "__main__":
    key = jax.random.PRNGKey(0)
    kx, kwc, kbc, kwh, kbh = jax.random.split(key, 5)

    x = jax.random.normal(kx, (B, I, CIN, H, W), jnp.float32)
    # Conv weight kept in HWIO layout (equivalent to permuting PyTorch OIHW).
    wc = jax.random.normal(kwc, (3, 3, CIN, CF), jnp.float32) * 0.1
    bc = jax.random.normal(kbc, (CF,), jnp.float32) * 0.1
    wh = jax.random.normal(kwh, (CF, K), jnp.float32) * 0.1
    bh = jax.random.normal(kbh, (K,), jnp.float32) * 0.1

    out = jax.block_until_ready(conv_mil_forward(x, wc, bc, wh, bh))
    ref = reference(x, wc, bc, wh, bh)
    assert out.shape == (B, K)
    assert jnp.allclose(out, ref, atol=1e-4, rtol=1e-4), (out, ref)
    print("KERNEL_OK")
</pallas_src>

<mosaic_0001>
module attributes {stable_mosaic.version = 11 : i64} {
  func.func @kernel(%arg0: i32, %arg1: memref<1x36x768xf32, #tpu.memory_space<vmem>>, %arg2: memref<32x36xf32, #tpu.memory_space<vmem>>, %arg3: memref<32x1xf32, #tpu.memory_space<vmem>>, %arg4: memref<32x128xf32, #tpu.memory_space<vmem>>, %arg5: memref<1x128xf32, #tpu.memory_space<vmem>>, %arg6: memref<1x1x128xf32, #tpu.memory_space<vmem>>) attributes {dimension_semantics = [#tpu.dimension_semantics<parallel>], iteration_bounds = array<i64: 2>, scalar_prefetch = 0 : i64, scratch_operands = 0 : i64, tpu.core_type = #tpu.core_type<tc>, window_params = [{transform_indices = @transform_0, window_bounds = array<i64: 1, 36, 768>}, {pipeline_mode = #tpu.pipeline_mode<synchronous>, transform_indices = @transform_1, window_bounds = array<i64: 32, 36>}, {pipeline_mode = #tpu.pipeline_mode<synchronous>, transform_indices = @transform_2, window_bounds = array<i64: 32, 1>}, {pipeline_mode = #tpu.pipeline_mode<synchronous>, transform_indices = @transform_3, window_bounds = array<i64: 32, 128>}, {pipeline_mode = #tpu.pipeline_mode<synchronous>, transform_indices = @transform_4, window_bounds = array<i64: 1, 128>}, {transform_indices = @transform_5, window_bounds = array<i64: 1, 1, 128>}]} {
    %c0 = arith.constant 0 : index
    %c0_0 = arith.constant 0 : index
    %c0_1 = arith.constant 0 : index
    %0 = vector.load %arg1[%c0, %c0_0, %c0_1] : memref<1x36x768xf32, #tpu.memory_space<vmem>>, vector<1x36x768xf32>
    %1 = vector.shape_cast %0 : vector<1x36x768xf32> to vector<36x768xf32>
    %c0_2 = arith.constant 0 : index
    %c0_3 = arith.constant 0 : index
    %2 = vector.load %arg2[%c0_2, %c0_3] : memref<32x36xf32, #tpu.memory_space<vmem>>, vector<32x36xf32>
    %cst = arith.constant dense<0.000000e+00> : vector<32x768xf32>
    %3 = tpu.matmul %2, %1, %cst {dimension_numbers = #tpu.dot_dimension_numbers<[1], [0], [0], [1], [0, 0, 1, 1], [], []>} : vector<32x36xf32>, vector<36x768xf32>, vector<32x768xf32> -> vector<32x768xf32>
    %c0_4 = arith.constant 0 : index
    %c0_5 = arith.constant 0 : index
    %4 = vector.load %arg3[%c0_4, %c0_5] : memref<32x1xf32, #tpu.memory_space<vmem>>, vector<32x1xf32>
    %5 = vector.broadcast %4 : vector<32x1xf32> to vector<32x768xf32>
    %6 = arith.addf %3, %5 : vector<32x768xf32>
    %cst_6 = arith.constant 0.000000e+00 : f32
    %7 = vector.broadcast %cst_6 : f32 to vector<32x768xf32>
    %8 = arith.maximumf %6, %7 : vector<32x768xf32>
    %cst_7 = arith.constant dense<0.000000e+00> : vector<32xf32>
    %9 = vector.multi_reduction <add>, %8, %cst_7 [1] : vector<32x768xf32> to vector<32xf32>
    %10 = vector.shape_cast %9 : vector<32xf32> to vector<32x1xf32>
    %cst_8 = arith.constant 0.00130208337 : f32
    %11 = vector.broadcast %cst_8 : f32 to vector<32x1xf32>
    %12 = arith.mulf %10, %11 : vector<32x1xf32>
    %13 = tpu.transpose %12, [1, 0] : vector<32x1xf32> -> vector<1x32xf32>
    %c0_9 = arith.constant 0 : index
    %c0_10 = arith.constant 0 : index
    %14 = vector.load %arg4[%c0_9, %c0_10] : memref<32x128xf32, #tpu.memory_space<vmem>>, vector<32x128xf32>
    %cst_11 = arith.constant dense<0.000000e+00> : vector<1x128xf32>
    %15 = tpu.matmul %13, %14, %cst_11 {dimension_numbers = #tpu.dot_dimension_numbers<[1], [0], [0], [1], [0, 0, 1, 1], [], []>} : vector<1x32xf32>, vector<32x128xf32>, vector<1x128xf32> -> vector<1x128xf32>
    %c0_12 = arith.constant 0 : index
    %c0_13 = arith.constant 0 : index
    %16 = vector.load %arg5[%c0_12, %c0_13] : memref<1x128xf32, #tpu.memory_space<vmem>>, vector<1x128xf32>
    %17 = arith.addf %15, %16 : vector<1x128xf32>
    %18 = vector.shape_cast %17 : vector<1x128xf32> to vector<1x1x128xf32>
    %c0_14 = arith.constant 0 : index
    %c0_15 = arith.constant 0 : index
    %c0_16 = arith.constant 0 : index
    %19 = vector.load %arg6[%c0_14, %c0_15, %c0_16] : memref<1x1x128xf32, #tpu.memory_space<vmem>>, vector<1x1x128xf32>
    tpu.vector_store %arg6[%c0_14, %c0_15, %c0_16], %18 {strides = array<i32>} : memref<1x1x128xf32, #tpu.memory_space<vmem>>, vector<1x1x128xf32>,
    return
  }
  func.func @transform_0(%arg0: i32) -> (i32, i32, i32) {
    %c0_i32 = arith.constant 0 : i32
    %c0_i32_0 = arith.constant 0 : i32
    %c0_i32_1 = arith.constant 0 : i32
    return %arg0, %c0_i32, %c0_i32_0 : i32, i32, i32
  }
  func.func @transform_1(%arg0: i32) -> (i32, i32) {
    %c0_i32 = arith.constant 0 : i32
    %c0_i32_0 = arith.constant 0 : i32
    %c0_i32_1 = arith.constant 0 : i32
    return %c0_i32, %c0_i32_0 : i32, i32
  }
  func.func @transform_2(%arg0: i32) -> (i32, i32) {
    %c0_i32 = arith.constant 0 : i32
    %c0_i32_0 = arith.constant 0 : i32
    %c0_i32_1 = arith.constant 0 : i32
    return %c0_i32, %c0_i32_0 : i32, i32
  }
  func.func @transform_3(%arg0: i32) -> (i32, i32) {
    %c0_i32 = arith.constant 0 : i32
    %c0_i32_0 = arith.constant 0 : i32
    %c0_i32_1 = arith.constant 0 : i32
    return %c0_i32, %c0_i32_0 : i32, i32
  }
  func.func @transform_4(%arg0: i32) -> (i32, i32) {
    %c0_i32 = arith.constant 0 : i32
    %c0_i32_0 = arith.constant 0 : i32
    %c0_i32_1 = arith.constant 0 : i32
    return %c0_i32, %c0_i32_0 : i32, i32
  }
  func.func @transform_5(%arg0: i32) -> (i32, i32, i32) {
    %c0_i32 = arith.constant 0 : i32
    %c0_i32_0 = arith.constant 0 : i32
    %c0_i32_1 = arith.constant 0 : i32
    return %arg0, %c0_i32, %c0_i32_0 : i32, i32, i32
  }
}

</mosaic_0001>

<bundles_post_ra>
// kernel: tpu_custom_call.1
= control target key start
LH: loop header
LB: loop body
LE: loop exit
PB: predicated region body
PF: predicated region fallthrough
CT: control target
= control target key end

     0   :  { %10 = vsyncpa [#allocation3], 0  ;;  %s1231_s0 = inlined_call_operand.vmem [shape: f32[2,36,768], index: 0, kind: input, shape index: {}]   ;;  %s1232_s1 = inlined_call_operand.vmem [shape: f32[32,36], index: 1, kind: input, shape index: {}]   ;;  %s1233_s2 = inlined_call_operand.vmem [shape: f32[32,1], index: 2, kind: input, shape index: {}]   ;;  %s1234_s3 = inlined_call_operand.vmem [shape: f32[32,128], index: 3, kind: input, shape index: {}]   ;;  %s1235_s4 = inlined_call_operand.vmem [shape: f32[1,128], index: 4, kind: input, shape index: {}]   ;;  %s1236_s5 = inlined_call_operand.hbm [shape: f32[2,1,128], index: 5, kind: output, shape index: {}]  }
   0x1   :  { %12 = vsyncpa [#allocation3 + $0x1], 0  ;;  %s1009_s18 = smov 0   ;;  %s1011_s19 = smov 0  }
   0x2   :  { %s1013_s20 = smov 0   ;;  %s1015_s21 = smov 0  }
   0x3 LB: > { %s1030_s22 = sadd.s32 4294967295, %s973_s21   ;;  %s815_s23 = sadd.s32 4294967294, %s973_s21   ;;  %s973_s21 = sphi %s1015_s21, %s1242_s21   ;;  %s969_s20 = sphi %s1013_s20, %s1241_s20   ;;  %s965_s19 = sphi %s1011_s19, %s1240_s19   ;;  %s961_s18 = sphi %s1009_s18, %s1239_s18  }
   0x4   : > { %s1034_s24 = sadd.s32 1, %s973_s21   ;;  %s135_s25 = sadd.s32 1, %s969_s20 }
   0x5   : > { %s132_s26 = ssub.s32 %s973_s21, %s1034_s24  ;;  %p145_p0 = scmp.ne.s32.totalorder %s969_s20, %s965_s19 }
   0x6   : > { %p133_p1 = scmp.eq.s32.totalorder %s132_s26, 0  ;;  %p146_p2 = scmp.eq.s32.totalorder %s1030_s22, 1 }
   0x7   : > { %p151_p3 = scmp.ne.s32.totalorder %s965_s19, %s961_s18  ;;  %p152_p4 = scmp.eq.s32.totalorder %s815_s23, 1 }
   0x8   : > { %s1045_s27 = scalar_select %p133_p1, %s969_s20, %s135_s25  }
   0x9   : > { %p1047_p5 = por %p146_p2, %p145_p0  ;;  %p1051_p6 = por %p152_p4, %p151_p3 }
   0xa   : > { %p818_p7 = scmp.ge.s32.totalorder %s973_s21, 1  ;;  %p190_p8 = scmp.lt.s32.totalorder %s973_s21, 3 }
   0xc   : > { %p191_p9 = pnand %p818_p7, %p190_p8 }
   0xd   : > { %p217_p10 = scmp.lt.s32.totalorder (!%p191_p9), %s1030_s22, 1  ;;  %s215_s23 = sand.u32 (!%p191_p9), 1, %s965_s19  }
   0xe   : > { %194 = sbr.rel (%p191_p9) target bundleno = 726 (0x2d6), region = 40  ;;  %s839_s30 = sshll.u32 (!%p191_p9), %s1030_s22, 4 }
   0xf   : > { %s216_s6 = scalar_lea.vmem (!%p191_p9), [#allocation2], %s215_s23  ;;  %s748_s11 = scalar_lea.sflag (!%p191_p9), [#allocation3], %s215_s23 }
  0x10   : > { %s978_s13 = smov (!%p191_p9), [#allocation2]  }
  0x13   : > { %v975_v0 = vmov 0.0   ;;  %v258_v1 = vld [vmem:[%s1233_s2 + $0x10] sm:$0xff]  ;;  %s218_s7 = scalar_select %p217_p10, %s1030_s22, 1  ;;  %v976_v2 = vmov 0   ;;  %v256_v3 = vld [vmem:[%s1233_s2] sm:$0xff]  ;;  %v259_v4 = vld [vmem:[%s1233_s2 + $0x18] sm:$0xff] }
  0x14   : > { %376 = vmatprep.mubr.f32.mxu0 %v975_v0  ;;  %394 = vmatprep.mubr.f32.mxu1 %v975_v0  ;;  %v257_v5 = vld [vmem:[%s1233_s2 + $0x8] sm:$0xff]  ;;  %vm293_vm0 = vcmask 1043456   ;;  %v252_v16 = vld [vmem:[%s1232_s1] sm:$0xff]  ;;  %vm280_vm1 = vcmask 293888   ;;  %v1098_v17 = vld [vmem:[%s1232_s1 + $0x18] sm:$0xff]  ;;  %vm977_vm2 = vmmov 0  }
  0x15   : > { %912 = vset.pattern.permute.xlu1 %v976_v2  ;;  %911 = vset.pattern.permute.xlu0 %v976_v2  ;;  %s868_s10 = smul.u32 240, %s218_s7  ;;  %v253_v24 = vld [vmem:[%s1232_s1 + $0x8] sm:$0xff]  ;;  %v254_v34 = vld [vmem:[%s1232_s1 + $0x10] sm:$0xff]  ;;  %vm672_vm3 = vcmask 261120   ;;  %s760_s7 = sshll.u32 %s216_s6, 4  ;;  %s761_s7 = int_to_ptr.vmem [resolvable:$true] %s760_s7 }
  0x16   : > { %272 = vperm.xlu1 %912, %v258_v1   ;;  %262 = vperm.xlu0 %911, %v256_v3   ;;  %s913_s12 = scalar_lea.vmem %s761_s7, 16  ;;  %s917_s22 = sshll.u32 %s978_s13, 4  ;;  %s918_s22 = int_to_ptr.vmem [resolvable:$false] %s917_s22 }
  0x17   : > { %s1076_s17 = scalar_lea.vmem %s1231_s0, %s868_s10  ;;  %s1196_s10 = scalar_lea.hbm %s1236_s5, %s839_s30 }
  0x18   : > { %v247_v6 = vld [vmem:[%s1076_s17 + $0xc8] sm:$0xf]  ;;  %v246_v7 = vld [vmem:[%s1076_s17 + $0xc0] sm:$0xf]  ;;  %v241_v8 = vld [vmem:[%s1076_s17 + $0x98] sm:$0xff]  ;;  %p914_p11 = scmp.ne.s32.totalorder %s761_s7, %s913_s12  ;;  %s919_s14 = scalar_lea.vmem %s918_s22, 32 }
  0x19   : > { %820 = vmatprep.subr.msk.mxu0 %vm293_vm0, %v247_v6  ;;  %858 = vmatprep.subr.msk.mxu1 %vm293_vm0, %v247_v6  ;;  %v240_v9 = vld [vmem:[%s1076_s17 + $0x90] sm:$0xff]  ;;  %v235_v10 = vld [vmem:[%s1076_s17 + $0x68] sm:$0xff]  ;;  %v234_v11 = vld [vmem:[%s1076_s17 + $0x60] sm:$0xff]  ;;  %p920_p0 = scmp.lt.s32.totalorder %s761_s7, %s918_s22  ;;  %p921_p1 = scmp.lt.s32.totalorder %s919_s14, %s913_s12 }
  0x1a   : > { %277 = vperm.xlu1 %912, %v259_v4   ;;  %267 = vperm.xlu0 %911, %v257_v5   ;;  %v229_v12 = vld [vmem:[%s1076_s17 + $0x38] sm:$0xff]  ;;  %v228_v13 = vld [vmem:[%s1076_s17 + $0x30] sm:$0xff]  ;;  %v223_v14 = vld [vmem:[%s1076_s17 + $0x8] sm:$0xff]  ;;  %p915_p12 = pnand %p914_p11, %p1047_p5 }
  0x1b   : > { %821 = vmatpush1.msk.msra.mxu0 %vm293_vm0, %v246_v7  ;;  %863 = vmatpush1.msk.msra.mxu1 %vm293_vm0, %v246_v7  ;;  %v222_v15 = vld [vmem:[%s1076_s17] sm:$0xff]  ;;  %v249_v18 = vld [vmem:[%s1076_s17 + $0xd8] sm:$0xf]  ;;  %v251_v19 = vld [vmem:[%s1076_s17 + $0xe8] sm:$0xf]  ;;  %p922_p2 = por %p921_p1, %p920_p0 }
  0x1c   : > { %336 = vmatprep.subr.mxu0 %v241_v8  ;;  %859 = vmatprep.subr.mxu1 %v241_v8  ;;  %v248_v20 = vld [vmem:[%s1076_s17 + $0xd0] sm:$0xf]  ;;  %v250_v21 = vld [vmem:[%s1076_s17 + $0xe0] sm:$0xf]  ;;  %v243_v22 = vld [vmem:[%s1076_s17 + $0xa8] sm:$0xff]  ;;  %p916_p13 = pneg %p915_p12 }
  0x1d   : > { %337 = vmatpush1.msra.mxu0 %v240_v9  ;;  %864 = vmatpush1.msra.mxu1 %v240_v9  ;;  %v242_v23 = vld [vmem:[%s1076_s17 + $0xa0] sm:$0xff]  ;;  %v237_v25 = vld [vmem:[%s1076_s17 + $0x78] sm:$0xff]  ;;  %v236_v27 = vld [vmem:[%s1076_s17 + $0x70] sm:$0xff] }
  0x1e   : > { %338 = vmatprep.subr.mxu0 %v235_v10  ;;  %860 = vmatprep.subr.mxu1 %v235_v10  ;;  %v245_v26 = vld [vmem:[%s1076_s17 + $0xb8] sm:$0xff]  ;;  %v244_v28 = vld [vmem:[%s1076_s17 + $0xb0] sm:$0xff]  ;;  %v231_v29 = vld [vmem:[%s1076_s17 + $0x48] sm:$0xff]  ;;  %p923_p3 = pnand %p922_p2, %p916_p13 }
  0x1f   : > { %339 = vmatpush1.msra.mxu0 %v234_v11  ;;  %865 = vmatpush1.msra.mxu1 %v234_v11  ;;  %v239_v30 = vld [vmem:[%s1076_s17 + $0x88] sm:$0xff]  ;;  %v230_v31 = vld [vmem:[%s1076_s17 + $0x40] sm:$0xff]  ;;  %v225_v33 = vld [vmem:[%s1076_s17 + $0x18] sm:$0xff] }
  0x20   : > { %340 = vmatprep.subr.mxu0 %v229_v12  ;;  %861 = vmatprep.subr.mxu1 %v229_v12  ;;  %v238_v32 = vld [vmem:[%s1076_s17 + $0x80] sm:$0xff]  ;;  %v233_v35 = vld [vmem:[%s1076_s17 + $0x58] sm:$0xff]  ;;  %v224_v36 = vld [vmem:[%s1076_s17 + $0x10] sm:$0xff] }
  0x21   : > { %341 = vmatpush1.msra.mxu0 %v228_v13  ;;  %866 = vmatpush1.msra.mxu1 %v228_v13  ;;  %v232_v37 = vld [vmem:[%s1076_s17 + $0x50] sm:$0xff]  ;;  %v227_v38 = vld [vmem:[%s1076_s17 + $0x28] sm:$0xff]  ;;  %v226_v39 = vld [vmem:[%s1076_s17 + $0x20] sm:$0xff] }
  0x22   : > { %342 = vmatprep.subr.mxu0 %v223_v14  ;;  %862 = vmatprep.subr.mxu1 %v223_v14 }
  0x23   : > { %343 = vmatpush1.msra.mxu0 %v222_v15  ;;  %867 = vmatpush1.msra.mxu1 %v222_v15 }
  0x24   : > { %822 = vmatmul.mubr.msk.f32.vlgmr.msra.gmra.mxu0 %vm280_vm1, %v252_v16  ;;  %825 = vmatmul.mubr.msk.f32.vlgmr.msra.gmra.mxu1 %vm280_vm1, %v1098_v17 }
  0x25   : > { %826 = vmatprep.subr.msk.mxu1 %vm293_vm0, %v249_v18  ;;  %832 = vmatprep.subr.msk.mxu0 %vm293_vm0, %v251_v19 }
  0x26   : > { %827 = vmatpush1.msk.msra.mxu1 %vm293_vm0, %v248_v20  ;;  %833 = vmatpush1.msk.msra.mxu0 %vm293_vm0, %v250_v21 }
  0x27   : > { %425 = vmatprep.subr.mxu1 %v243_v22  ;;  %382 = vmatprep.mubr.f32.mxu0 %v975_v0 }
  0x28   : > { %426 = vmatpush1.msra.mxu1 %v242_v23  ;;  %823 = vmatmul.mubr.msk.f32.gmra.mxu0 %vm280_vm1, %v253_v24 }
  0x29   : > { %427 = vmatprep.subr.mxu1 %v237_v25  ;;  %514 = vmatprep.subr.mxu0 %v245_v26 }
  0x2a   : > { %428 = vmatpush1.msra.mxu1 %v236_v27  ;;  %515 = vmatpush1.msra.mxu0 %v244_v28 }
  0x2b   : > { %429 = vmatprep.subr.mxu1 %v231_v29  ;;  %516 = vmatprep.subr.mxu0 %v239_v30 }
  0x2c   : > { %388 = vmatprep.mubr.f32.mxu0 %v975_v0  ;;  %430 = vmatpush1.msra.mxu1 %v230_v31 }
  0x2d   : > { %517 = vmatpush1.msra.mxu0 %v238_v32  ;;  %431 = vmatprep.subr.mxu1 %v225_v33 }
  0x2e   : > { %824 = vmatmul.mubr.msk.f32.gmra.mxu0 %vm280_vm1, %v254_v34  ;;  %518 = vmatprep.subr.mxu0 %v233_v35 }
  0x2f   : > { %432 = vmatpush1.msra.mxu1 %v224_v36  ;;  %465 = vmatprep.mubr.f32.mxu1 %v975_v0 }
  0x30   : > { %519 = vmatpush1.msra.mxu0 %v232_v37  ;;  %828 = vmatmul.mubr.msk.f32.vlgmr.msra.gmra.mxu1 %vm280_vm1, %v252_v16 }
  0x31   : > { %520 = vmatprep.subr.mxu0 %v227_v38  ;;  %554 = vmatprep.mubr.f32.mxu0 %v975_v0 }
  0x32   : > { %521 = vmatpush1.msra.mxu0 %v226_v39  ;;  %471 = vmatprep.mubr.f32.mxu1 %v975_v0 }
  0x33   : > { %834 = vmatmul.mubr.msk.f32.vlgmr.msra.gmra.mxu0 %vm280_vm1, %v252_v16  ;;  %847 = vmatprep.subr.mxu1 %v975_v0 }
  0x34   : > { %829 = vmatmul.mubr.msk.f32.gmra.mxu1 %vm280_vm1, %v253_v24  ;;  %560 = vmatprep.mubr.f32.mxu0 %v975_v0 }
  0x35   : > { %477 = vmatprep.mubr.f32.mxu1 %v975_v0 }
  0x37   : > { %835 = vmatmul.mubr.msk.f32.gmra.mxu0 %vm280_vm1, %v253_v24 }
  0x38   : > { %830 = vmatmul.mubr.msk.f32.gmra.mxu1 %vm280_vm1, %v254_v34  ;;  %566 = vmatprep.mubr.f32.mxu0 %v975_v0 }
  0x39   : > { %483 = vmatprep.mubr.f32.mxu1 %v975_v0 }
  0x3b   : > { %836 = vmatmul.mubr.msk.f32.gmra.mxu0 %vm280_vm1, %v254_v34 }
  0x3c   : > { %831 = vmatmul.mubr.msk.f32.gmra.mxu1 %vm280_vm1, %v1098_v17  ;;  %572 = vmatprep.mubr.f32.mxu0 %v975_v0 }
  0x3d   : > { %855 = vmatprep.mubr.msk.f32.mxu1 %vm977_vm2, %v975_v0 }
  0x3f   : > { %837 = vmatmul.mubr.msk.f32.gmra.mxu0 %vm280_vm1, %v1098_v17 }
  0x91   : > { %v263_v41 = vpop.permute.xlu0 %262  ;;  %v1156_v46 = vpop.permute.xlu1 %272 }
  0x95   : > { %v268_v49 = vpop.permute.xlu0 %267  ;;  %v1158_v58 = vpop.permute.xlu1 %277 }
  0xe4   : > { %v378_v40 = vpop.f32.mrf.mxu0  ;;  %v396_v44 = vpop.f32.mrf.mxu1 }
  0xe5   : > { %v379_v47 = vadd.f32 %v378_v40, %v263_v41  ;;  %v397_v6 = vadd.f32 %v396_v44, %v1158_v58 }
  0xe6   : > { %v380_v42 = vpop.f32.mrf.mxu0  ;;  %v398_v50 = vpop.f32.mrf.mxu1 }
  0xe7   : > { %v381_v48 = vadd.f32 %v380_v42, %v263_v41  ;;  %v579_v54 = vmax.f32 %v379_v47, 0.0  ;;  %v399_v9 = vadd.f32 %v398_v50, %v1158_v58  ;;  %v597_v24 = vmax.f32 %v397_v6, 0.0 }
  0xe8   : > { %v384_v43 = vpop.f32.mrf.mxu0 }
  0xe9   : > { %v385_v51 = vadd.f32 %v384_v43, %v268_v49  ;;  %v580_v55 = vmax.f32 %v381_v48, 0.0  ;;  %v598_v33 = vmax.f32 %v399_v9, 0.0 }
  0xea   : > { %v386_v45 = vpop.f32.mrf.mxu0 }
  0xeb   : > { %v387_v52 = vadd.f32 %v386_v45, %v268_v49  ;;  %v585_v60 = vmax.f32 %v385_v51, 0.0  ;;  %v603_v2 = vadd.f32 %v580_v55, %v579_v54 }
  0xed   : > { %v586_v61 = vmax.f32 %v387_v52, 0.0 }
  0xee   : > { %v390_v53 = vpop.f32.mrf.mxu0 }
  0xef   : > { %v391_v62 = vadd.f32 %v390_v53, %v1156_v46  ;;  %v610_v14 = vadd.f32 %v586_v61, %v585_v60  ;;  %v624_v53 = vadd.f32 %v598_v33, %v597_v24 }
  0xf0   : > { %v392_v56 = vpop.f32.mrf.mxu0  ;;  %v467_v57 = vpop.f32.mrf.mxu1 }
  0xf1   : > { %v468_v59 = vadd.f32 %v467_v57, %v263_v41  ;;  %v393_v63 = vadd.f32 %v392_v56, %v1156_v46  ;;  %v591_v15 = vmax.f32 %v391_v62, 0.0 }
  0xf2   : > { %v469_v1 = vpop.f32.mrf.mxu1 }
  0xf3   : > { %v581_v3 = vmax.f32 %v468_v59, 0.0  ;;  %v470_v4 = vadd.f32 %v469_v1, %v263_v41  ;;  %v556_v5 = vpop.f32.mrf.mxu0  ;;  %v592_v16 = vmax.f32 %v393_v63, 0.0 }
  0xf4   : > { %v557_v7 = vadd.f32 %v556_v5, %v263_v41  ;;  %v473_v8 = vpop.f32.mrf.mxu1 }
  0xf5   : > { %v604_v10 = vadd.f32 %v603_v2, %v581_v3  ;;  %v582_v11 = vmax.f32 %v470_v4, 0.0  ;;  %v474_v12 = vadd.f32 %v473_v8, %v268_v49  ;;  %v558_v13 = vpop.f32.mrf.mxu0  ;;  %v617_v34 = vadd.f32 %v592_v16, %v591_v15 }
  0xf6   : > { %v559_v17 = vadd.f32 %v558_v13, %v263_v41  ;;  %v475_v18 = vpop.f32.mrf.mxu1  ;;  %v583_v20 = vmax.f32 %v557_v7, 0.0  ;;  %v667_v13 = vld [vmem:[%s1234_s3] sm:$0xff] }
  0xf7   : > { %v605_v19 = vadd.f32 %v604_v10, %v582_v11  ;;  %v587_v21 = vmax.f32 %v474_v12, 0.0  ;;  %v476_v22 = vadd.f32 %v475_v18, %v268_v49  ;;  %v562_v23 = vpop.f32.mrf.mxu0  ;;  %v670_v11 = vld [vmem:[%s1234_s3 + $0x18] sm:$0xff]  ;;  %v669_v12 = vld [vmem:[%s1234_s3 + $0x10] sm:$0xff] }
  0xf8   : > { %v584_v25 = vmax.f32 %v559_v17, 0.0  ;;  %v563_v26 = vadd.f32 %v562_v23, %v268_v49  ;;  %v479_v27 = vpop.f32.mrf.mxu1  ;;  %848 = vmatpush3.msra.mxu1 %v670_v11 }
  0xf9   : > { %v606_v28 = vadd.f32 %v605_v19, %v583_v20  ;;  %v611_v29 = vadd.f32 %v610_v14, %v587_v21  ;;  %v588_v30 = vmax.f32 %v476_v22, 0.0  ;;  %v480_v31 = vadd.f32 %v479_v27, %v1156_v46  ;;  %v564_v32 = vpop.f32.mrf.mxu0  ;;  %849 = vmatprep.subr.mxu1 %v975_v0 }
  0xfa   : > { %v589_v35 = vmax.f32 %v563_v26, 0.0  ;;  %v565_v36 = vadd.f32 %v564_v32, %v268_v49  ;;  %v481_v37 = vpop.f32.mrf.mxu1  ;;  %850 = vmatpush3.msra.mxu1 %v669_v12 }
  0xfb   : > { %v612_v38 = vadd.f32 %v611_v29, %v588_v30  ;;  %v593_v39 = vmax.f32 %v480_v31, 0.0  ;;  %v482_v40 = vadd.f32 %v481_v37, %v1156_v46  ;;  %v568_v41 = vpop.f32.mrf.mxu0  ;;  %v607_v42 = vadd.f32 %v606_v28, %v584_v25  ;;  %851 = vmatprep.subr.mxu1 %v975_v0 }
  0xfc   : > { %v590_v43 = vmax.f32 %v565_v36, 0.0  ;;  %v569_v44 = vadd.f32 %v568_v41, %v1156_v46  ;;  %v485_v45 = vpop.f32.mrf.mxu1 }
  0xfd   : > { %v613_v47 = vadd.f32 %v612_v38, %v589_v35  ;;  %v618_v48 = vadd.f32 %v617_v34, %v593_v39  ;;  %v594_v50 = vmax.f32 %v482_v40, 0.0  ;;  %v486_v51 = vadd.f32 %v485_v45, %v1158_v58  ;;  %v570_v52 = vpop.f32.mrf.mxu0  ;;  %608 = vadd.xlane.f32.xlu0 %v607_v42 }
  0xfe   : > { %v595_v49 = vmax.f32 %v569_v44, 0.0  ;;  %v571_v54 = vadd.f32 %v570_v52, %v1156_v46  ;;  %v487_v55 = vpop.f32.mrf.mxu1 }
  0xff   : > { %v619_v56 = vadd.f32 %v618_v48, %v594_v50  ;;  %v599_v57 = vmax.f32 %v486_v51, 0.0  ;;  %v488_v59 = vadd.f32 %v487_v55, %v1158_v58  ;;  %v574_v60 = vpop.f32.mrf.mxu0  ;;  %v614_v61 = vadd.f32 %v613_v47, %v590_v43 }
 0x100   : > { %v575_v62 = vadd.f32 %v574_v60, %v1158_v58  ;;  %v596_v2 = vmax.f32 %v571_v54, 0.0 }
 0x101   : > { %v620_v63 = vadd.f32 %v619_v56, %v595_v49  ;;  %v625_v1 = vadd.f32 %v624_v53, %v599_v57  ;;  %v600_v3 = vmax.f32 %v488_v59, 0.0  ;;  %v576_v4 = vpop.f32.mrf.mxu0  ;;  %615 = vadd.xlane.f32.xlu1 %v614_v61 }
 0x102   : > { %v577_v5 = vadd.f32 %v576_v4, %v1158_v58  ;;  %v601_v7 = vmax.f32 %v575_v62, 0.0  ;;  %v668_v58 = vld [vmem:[%s1234_s3 + $0x8] sm:$0xff] }
 0x103   : > { %v626_v6 = vadd.f32 %v625_v1, %v600_v3  ;;  %v621_v46 = vadd.f32 %v620_v63, %v596_v2  ;;  %852 = vmatpush3.msra.mxu1 %v668_v58 }
 0x104   : > { %v602_v9 = vmax.f32 %v577_v5, 0.0  ;;  %853 = vmatprep.subr.mxu1 %v975_v0  ;;  %v671_v0 = vld [vmem:[%s1235_s4] sm:$0x1] }
 0x105   : > { %v627_v8 = vadd.f32 %v626_v6, %v601_v7  ;;  %622 = vadd.xlane.f32.xlu0 %v621_v46  ;;  %854 = vmatpush3.msra.mxu1 %v667_v13 }
 0x107   : > { %v628_v10 = vadd.f32 %v627_v8, %v602_v9 }
 0x109   : > { %629 = vadd.xlane.f32.xlu0 %v628_v10 }
 0x186   : > { %v609_v14 = vpop.xlane.xlu0 %608 }
 0x187   : > { %v631_v15 = vmul.f32 0.0013020834, %v609_v14 }
 0x189   : > { %635 = vxpose.xlu1.b32.start [1/4] (short) (narrow) %v631_v15, 8 }
 0x18a   : > { %v616_v16 = vpop.xlane.xlu1 %615 }
 0x18b   : > { %v632_v17 = vmul.f32 0.0013020834, %v616_v16 }
 0x18d   : > { %636 = vxpose.xlu1.b32.cont [2/4] (short) (narrow) %v632_v17, 8 }
 0x18e   : > { %v623_v18 = vpop.xlane.xlu0 %622 }
 0x18f   : > { %v633_v19 = vmul.f32 0.0013020834, %v623_v18 }
 0x191   : > { %637 = vxpose.xlu1.b32.cont [3/4] (short) (narrow) %v633_v19, 8 }
 0x192   : > { %v630_v20 = vpop.xlane.xlu0 %629 }
 0x193   : > { %v634_v21 = vmul.f32 0.0013020834, %v630_v20 }
 0x195   : > { %638 = vxpose.xlu1.b32.end [4/4] (short) (narrow) %v634_v21, 8 }
 0x205   : > { %v651_v22 = vpop.trf.xlu1 }
 0x206   : > { %856 = vmatmul.mubr.msk.f32.vlgmr.msra.gmra.mxu1 %vm672_vm3, %v651_v22 }
 0x2c6   : > { %v742_v23 = vpop.f32.mrf.mxu1 }
 0x2c7   : > { %v743_v24 = vadd.f32 %v742_v23, %v671_v0 }
 0x2c8   : > { %v857_v25 = vpop.f32.mrf.mxu1 }
 0x2c9   : > { %746 = vst [vmem:[%s216_s6] sm:$0x1] %v743_v24 }
 0x2ca   : > { %926 = shalt.err (!%p923_p3)
}
 0x2cb   : > { %s927_s15 = scalar_lea.hbm %s1196_s10, 16  ;;  %s931_s23 = scalar_lea.hbm %s1236_s5, 32 }
 0x2cc   : > { %p928_p4 = scmp.ne.s32.totalorder %s1196_s10, %s927_s15  ;;  %p932_p9 = scmp.lt.s32.totalorder %s1196_s10, %s1236_s5 }
 0x2cd   : > { %p933_p10 = scmp.lt.s32.totalorder %s931_s23, %s927_s15 }
 0x2ce   : > { %p929_p7 = pnand %p928_p4, %p1047_p5 }
 0x2cf   : > { %p934_p11 = por %p933_p10, %p932_p9 }
 0x2d0   : > { %p930_p8 = pneg %p929_p7 }
 0x2d2   : > { %p935_p12 = pnand %p934_p11, %p930_p8 }
 0x2d4   : > { %938 = shalt.err (!%p935_p12)
}
 0x2d5   : > { %869 = dma.vmem_to_hbm [thread:$0]  (%p1047_p5), %s761_s7, 16, %s1196_s10, %s748_s11  }
 0x2d6 PF: > { %p875_p13 = scmp.ge.s32.totalorder %s973_s21, 2  ;;  %s772_s30 = sand.u32 1, %s961_s18  }
 0x2d7   : > { %s773_s6 = scalar_lea.sflag [#allocation3], %s772_s30 }
 0x2d8   : > { %p872_p0 = pnand %p875_p13, %p1051_p6 }
 0x2da   : > { %p873_p1 = pneg %p872_p0 }
 0x2dc   : > { %956 = dma.done.wait (%p873_p1), %s773_s6, 16  }
 0x2dd   : > { %958 = vsyncadd (%p873_p1), %s773_s6, 4294967280  ;;  %p15_p2 = scmp.ge.s32.totalorder %s1034_s24, 4   ;;  %s1239_s18 = smov %s965_s19 }
 0x2de   : > { %s1240_s19 = smov %s969_s20  ;;  %s1241_s20 = smov %s1045_s27 }
 0x2df   : > { %s1242_s21 = smov %s1034_s24  ;;  %17 = sbr.rel (!%p15_p2) target bundleno = 3 (0x3), region = 75 }
 0x2e4   :  { %777 = vsyncpa [#allocation3], 1 }
 0x2e5   :  { %779 = vsyncpa [#allocation3 + $0x1], 1 }

</bundles_post_ra>
